<compile_context>
chip_gen: v7x
topology: tpu7x:2x2x1
jax: 0.10.0
libtpu: 0.0.40
codegen_flags: <defaults>
</compile_context>

<pallas_src>
import functools

import jax
import jax.numpy as jnp
from jax import lax
from jax.experimental import pallas as pl
from jax.experimental.pallas import tpu as pltpu


def _multi_accuracy_kernel(logits_ref, labels_ref, out_ref, acc_ref, *, n_total):
    i = pl.program_id(0)

    @pl.when(i == 0)
    def _init():
        acc_ref[...] = jnp.zeros_like(acc_ref)

    x = logits_ref[...]                                   # (TN, C), native dtype
    tn, c = x.shape

    # argmax over classes: first index achieving the row max (matches
    # jnp.argmax / torch CPU tie-break).
    col = lax.broadcasted_iota(jnp.int32, (tn, c), 1)
    row_max = jnp.max(x, axis=1, keepdims=True)           # (TN, 1)
    cand = jnp.where(x == row_max, col, c)                # (TN, C) int32
    pred = jnp.min(cand, axis=1, keepdims=True)           # (TN, 1) int32

    lbl = labels_ref[...]                                 # (TN, 1) int32
    correct = pred == lbl                                 # (TN, 1) bool

    if n_total % tn != 0:
        # Mask rows belonging to the padded tail of the last tile.
        row = lax.broadcasted_iota(jnp.int32, (tn, 1), 0) + i * tn
        correct = jnp.logical_and(correct, row < n_total)

    # Sublane-partial accumulation: cheap VPU adds every tile, no per-tile
    # cross-sublane reduce.
    acc_ref[...] += jnp.where(correct, 1.0, 0.0).astype(jnp.float32)

    @pl.when(i == pl.num_programs(0) - 1)
    def _finalize():
        total = jnp.sum(acc_ref[...], axis=0, keepdims=True)    # (1, 1) - single XLU reduce
        out_ref[...] = total / jnp.float32(n_total)


def multi_accuracy(logits: jax.Array, labels: jax.Array,
                   num_classes: int | None = None, *, tile_n: int = 512) -> jax.Array:
    assert logits.ndim == 2 and labels.ndim == 1
    n, c = logits.shape
    assert labels.shape[0] == n
    if num_classes is not None:
        assert c == num_classes

    # Tile size: multiple of 8 (sublane), capped so (TN, C) f32 x 2 buffers plus
    # the lane-padded (TN, 128) label tile stays well inside the 32 MiB budget
    # on every generation (incl. v7x's 64 MiB physical VMEM).
    tn = min(tile_n, max(8, ((n + 7) // 8) * 8))
    grid = (pl.cdiv(n, tn),)

    labels2d = labels.reshape(n, 1).astype(jnp.int32)
    kernel = functools.partial(_multi_accuracy_kernel, n_total=n)

    out = pl.pallas_call(
        kernel,
        out_shape=jax.ShapeDtypeStruct((1, 1), jnp.float32),
        grid=grid,
        in_specs=[
            pl.BlockSpec((tn, c), lambda i: (i, 0)),      # logits tile, native dtype
            pl.BlockSpec((tn, 1), lambda i: (i, 0)),      # labels tile
        ],
        out_specs=pl.BlockSpec((1, 1), lambda i: (0, 0)), # resident accumulator output
        scratch_shapes=[pltpu.VMEM((tn, 1), jnp.float32)],
        compiler_params=pltpu.CompilerParams(
            dimension_semantics=("arbitrary",),
            vmem_limit_bytes=32 << 20,
        ),
    )(logits, labels2d)
    return out[0, 0]


def _reference_multi_accuracy(logits, labels):
    preds = jnp.argmax(logits, axis=1)
    return jnp.mean((preds == labels).astype(jnp.float32))


if __name__ == "__main__":
    key = jax.random.PRNGKey(0)
    k1, k2 = jax.random.split(key)

    # Small shapes; N chosen non-multiple of the tile so multi-step
    # accumulation and last-tile masking are exercised.
    N, NUM_CLASSES = 37, 5
    logits = jax.random.normal(k1, (N, NUM_CLASSES), dtype=jnp.float32)
    labels = jax.random.randint(k2, (N,), 0, NUM_CLASSES, dtype=jnp.int32)

    result = multi_accuracy(logits, labels, NUM_CLASSES, tile_n=8)
    result = jax.block_until_ready(result)

    ref = _reference_multi_accuracy(logits, labels)
    assert abs(float(result) - float(ref)) < 1e-6, (float(result), float(ref))

    print("KERNEL_OK")
</pallas_src>

<mosaic_0001>
module attributes {stable_mosaic.version = 11 : i64} {
  func.func @_multi_accuracy_kernel(%arg0: i32, %arg1: memref<8x5xf32, #tpu.memory_space<vmem>>, %arg2: memref<8x1xi32, #tpu.memory_space<vmem>>, %arg3: memref<1x1xf32, #tpu.memory_space<vmem>>, %arg4: memref<8x1xf32, #tpu.memory_space<vmem>>) attributes {dimension_semantics = [#tpu.dimension_semantics<arbitrary>], iteration_bounds = array<i64: 5>, scalar_prefetch = 0 : i64, scratch_operands = 1 : i64, tpu.core_type = #tpu.core_type<tc>, window_params = [{transform_indices = @transform_0, window_bounds = array<i64: 8, 5>}, {transform_indices = @transform_1, window_bounds = array<i64: 8, 1>}, {pipeline_mode = #tpu.pipeline_mode<synchronous>, transform_indices = @transform_2, window_bounds = array<i64: 1, 1>}]} {
    %c0_i32 = arith.constant 0 : i32
    %0 = arith.cmpi eq, %arg0, %c0_i32 : i32
    %1 = arith.extui %0 : i1 to i32
    %c0_i32_0 = arith.constant 0 : i32
    %2 = arith.cmpi ne, %1, %c0_i32_0 : i32
    scf.if %2 {
      %cst_12 = arith.constant 0.000000e+00 : f32
      %31 = vector.broadcast %cst_12 : f32 to vector<8x1xf32>
      %c0_13 = arith.constant 0 : index
      %c0_14 = arith.constant 0 : index
      %32 = vector.load %arg4[%c0_13, %c0_14] : memref<8x1xf32, #tpu.memory_space<vmem>>, vector<8x1xf32>
      tpu.vector_store %arg4[%c0_13, %c0_14], %31 {strides = array<i32>} : memref<8x1xf32, #tpu.memory_space<vmem>>, vector<8x1xf32>,
    } else {
    }
    %c0 = arith.constant 0 : index
    %c0_1 = arith.constant 0 : index
    %3 = vector.load %arg1[%c0, %c0_1] : memref<8x5xf32, #tpu.memory_space<vmem>>, vector<8x5xf32>
    %4 = tpu.iota {dimensions = array<i32: 1>} : vector<8x5xi32>
    %cst = arith.constant dense<0xFF800000> : vector<8xf32>
    %5 = vector.multi_reduction <maximumf>, %3, %cst [1] : vector<8x5xf32> to vector<8xf32>
    %6 = vector.shape_cast %5 : vector<8xf32> to vector<8x1xf32>
    %7 = vector.broadcast %6 : vector<8x1xf32> to vector<8x5xf32>
    %8 = arith.cmpf oeq, %3, %7 : vector<8x5xf32>
    %c5_i32 = arith.constant 5 : i32
    %9 = vector.broadcast %c5_i32 : i32 to vector<8x5xi32>
    %10 = arith.select %8, %4, %9 : vector<8x5xi1>, vector<8x5xi32>
    %cst_2 = arith.constant dense<2147483647> : vector<8xi32>
    %11 = vector.multi_reduction <minsi>, %10, %cst_2 [1] : vector<8x5xi32> to vector<8xi32>
    %12 = vector.shape_cast %11 : vector<8xi32> to vector<8x1xi32>
    %c0_3 = arith.constant 0 : index
    %c0_4 = arith.constant 0 : index
    %13 = vector.load %arg2[%c0_3, %c0_4] : memref<8x1xi32, #tpu.memory_space<vmem>>, vector<8x1xi32>
    %14 = arith.cmpi eq, %12, %13 : vector<8x1xi32>
    %15 = tpu.iota {dimensions = array<i32: 0>} : vector<8x1xi32>
    %c8_i32 = arith.constant 8 : i32
    %16 = arith.muli %arg0, %c8_i32 : i32
    %17 = vector.broadcast %16 : i32 to vector<8x1xi32>
    %18 = arith.addi %15, %17 : vector<8x1xi32>
    %c37_i32 = arith.constant 37 : i32
    %19 = vector.broadcast %c37_i32 : i32 to vector<8x1xi32>
    %20 = arith.cmpi slt, %18, %19 : vector<8x1xi32>
    %21 = arith.andi %14, %20 : vector<8x1xi1>
    %c0_5 = arith.constant 0 : index
    %c0_6 = arith.constant 0 : index
    %22 = vector.load %arg4[%c0_5, %c0_6] : memref<8x1xf32, #tpu.memory_space<vmem>>, vector<8x1xf32>
    %cst_7 = arith.constant 1.000000e+00 : f32
    %cst_8 = arith.constant 0.000000e+00 : f32
    %23 = vector.broadcast %cst_7 : f32 to vector<8x1xf32>
    %24 = vector.broadcast %cst_8 : f32 to vector<8x1xf32>
    %25 = arith.select %21, %23, %24 : vector<8x1xi1>, vector<8x1xf32>
    %26 = arith.addf %22, %25 : vector<8x1xf32>
    %c0_9 = arith.constant 0 : index
    %c0_10 = arith.constant 0 : index
    %27 = vector.load %arg4[%c0_9, %c0_10] : memref<8x1xf32, #tpu.memory_space<vmem>>, vector<8x1xf32>
    tpu.vector_store %arg4[%c0_9, %c0_10], %26 {strides = array<i32>} : memref<8x1xf32, #tpu.memory_space<vmem>>, vector<8x1xf32>,
    %c4_i32 = arith.constant 4 : i32
    %28 = arith.cmpi eq, %arg0, %c4_i32 : i32
    %29 = arith.extui %28 : i1 to i32
    %c0_i32_11 = arith.constant 0 : i32
    %30 = arith.cmpi ne, %29, %c0_i32_11 : i32
    scf.if %30 {
      %c0_12 = arith.constant 0 : index
      %c0_13 = arith.constant 0 : index
      %31 = vector.load %arg4[%c0_12, %c0_13] : memref<8x1xf32, #tpu.memory_space<vmem>>, vector<8x1xf32>
      %cst_14 = arith.constant dense<0.000000e+00> : vector<1xf32>
      %32 = vector.multi_reduction <add>, %31, %cst_14 [0] : vector<8x1xf32> to vector<1xf32>
      %33 = vector.shape_cast %32 : vector<1xf32> to vector<1x1xf32>
      %cst_15 = arith.constant 3.700000e+01 : f32
      %34 = vector.broadcast %cst_15 : f32 to vector<1x1xf32>
      %35 = arith.divf %33, %34 : vector<1x1xf32>
      %c0_16 = arith.constant 0 : index
      %c0_17 = arith.constant 0 : index
      %36 = vector.load %arg3[%c0_16, %c0_17] : memref<1x1xf32, #tpu.memory_space<vmem>>, vector<1x1xf32>
      tpu.vector_store %arg3[%c0_16, %c0_17], %35 {strides = array<i32>} : memref<1x1xf32, #tpu.memory_space<vmem>>, vector<1x1xf32>,
    } else {
    }
    return
  }
  func.func @transform_0(%arg0: i32) -> (i32, i32) {
    %c0_i32 = arith.constant 0 : i32
    %c0_i32_0 = arith.constant 0 : i32
    return %arg0, %c0_i32 : i32, i32
  }
  func.func @transform_1(%arg0: i32) -> (i32, i32) {
    %c0_i32 = arith.constant 0 : i32
    %c0_i32_0 = arith.constant 0 : i32
    return %arg0, %c0_i32 : i32, i32
  }
  func.func @transform_2(%arg0: i32) -> (i32, i32) {
    %c0_i32 = arith.constant 0 : i32
    %c0_i32_0 = arith.constant 0 : i32
    %c0_i32_1 = arith.constant 0 : i32
    return %c0_i32, %c0_i32_0 : i32, i32
  }
}

</mosaic_0001>

<bundles_post_ra>
// kernel: tpu_custom_call.1
= control target key start
LH: loop header
LB: loop body
LE: loop exit
PB: predicated region body
PF: predicated region fallthrough
CT: control target
= control target key end

     0   :  { %7 = vsyncpa [#allocation4], 0  ;;  %s348_s9 = smov 0   ;;  %s398_s0 = inlined_call_operand.vmem [shape: f32[37,5], index: 0, kind: input, shape index: {}]   ;;  %s399_s1 = inlined_call_operand.vmem [shape: s32[37,1], index: 1, kind: input, shape index: {}]   ;;  %s400_s2 = inlined_call_operand.hbm [shape: f32[1,1], index: 2, kind: output, shape index: {}]  }
   0x1 LB: > { %s354_s10 = sadd.s32 4294967295, %s328_s9   ;;  %p265_p0 = scmp.ge.s32.totalorder %s328_s9, 1  ;;  %s328_s9 = sphi %s348_s9, %s13_s9  }
   0x2   : > { %p116_p1 = scmp.lt.s32.totalorder %s328_s9, 6 }
   0x4   : > { %p117_p2 = pnand %p265_p0, %p116_p1 }
   0x5   : > { %p136_p3 = scmp.lt.s32.totalorder (!%p117_p2), %s354_s10, 4  ;;  %p268_p4 = scmp.ne.s32.totalorder (!%p117_p2), %s354_s10, 0 }
   0x6   : > { %120 = sbr.rel (%p117_p2) target bundleno = 516 (0x204), region = 28 }
   0xd   : > { %s137_s11 = scalar_select %p136_p3, %s354_s10, 4 }
   0xe   : > { %147 = sbr.rel (%p268_p4) target bundleno = 21 (0x15), region = 32  ;;  %vm148_vm0 = vcmask (!%p268_p4), 7168   ;;  %v330_v0 = vmov (!%p268_p4), 0.0  }
   0xf   : > { %s266_s12 = sshll.u32 %s137_s11, 3  ;;  %149 = vst.msk [vmem:[#allocation2] sm:$0xff] (!%p268_p4), %vm148_vm0, %v330_v0 }
  0x10   : > { %s139_s15 = scalar_lea.vmem %s398_s0, %s266_s12  ;;  %s366_s18 = scalar_lea.vmem %s399_s1, %s266_s12 }
  0x15 PF: > { %v150_v1 = vld [vmem:[%s139_s15] sm:$0xff]  ;;  %vm153_vm1 = vcmask 39936   ;;  %v151_v3 = vlaneseq  ;;  %s269_s19 = sshll.u32 %s354_s10, 3  ;;  %vm186_vm7 = vcmask 7168   ;;  %v331_v24 = vmov 0.0   ;;  %p270_p5 = scmp.ne.s32.totalorder %s354_s10, 4 }
  0x16   : > { %v154_v2 = vsel %vm153_vm1, %v150_v1, -inf  ;;  %v179_v15 = vstv %s269_s19  ;;  %v174_v21 = vld [vmem:[%s366_s18] sm:$0xff]  ;;  %vm202_vm8 = vcmask (!%p270_p5), 0  }
  0x17   : > { %155 = vmax.xlane.f32.xlu0 %v154_v2  ;;  %v152_v4 = vand.u32 127, %v151_v3  ;;  %v177_v14 = vshrl.u32 %v151_v3, 7  ;;  %v183_v23 = vld [vmem:[#allocation2] sm:$0xff] }
  0x19   : > { %v180_v17 = vadd.s32 %v179_v15, %v177_v14 }
  0x1b   : > { %vm181_vm4 = vcmp.lt.s32.totalorder %v180_v17, 37 }
  0xa4   : > { %v156_v5 = vpop.xlane.xlu0 %155 }
  0xa5   : > { %vm157_vm2 = vcmp.eq.f32.partialorder %v150_v1, %v156_v5 }
  0xa6   : > { %v158_v6 = vsel %vm157_vm2, %v152_v4, 5 }
  0xa7   : > { %v159_v7 = vsel %vm153_vm1, %v158_v6, 2147483647 }
  0xa8   : > { %v161_v8 = vshra.s32 %v159_v7, 16  ;;  %v160_v10 = vand.u32 65535, %v159_v7 }
  0xaa   : > { %v163_v9 = vcvt.s32.f32 %v161_v8  ;;  %v162_v12 = vcvt.s32.f32 %v160_v10 }
  0xac   : > { %164 = vmin.xlane.f32.xlu0 %v163_v9 }
 0x139   : > { %v165_v11 = vpop.xlane.xlu0 %164 }
 0x13a   : > { %vm166_vm3 = vcmp.eq.f32.partialorder %v163_v9, %v165_v11  ;;  %v171_v16 = vcvt.f32.s32 %v165_v11 }
 0x13b   : > { %v167_v13 = vsel %vm166_vm3, %v162_v12, inf }
 0x13c   : > { %168 = vmin.xlane.f32.xlu1 %v167_v13  ;;  %v172_v19 = vshll.u32 %v171_v16, 16 }
 0x1c9   : > { %v169_v18 = vpop.xlane.xlu1 %168 }
 0x1ca   : > { %v170_v20 = vcvt.f32.s32 %v169_v18 }
 0x1cc   : > { %v173_v22 = vadd.s32 %v172_v19, %v170_v20 }
 0x1cd   : > { %191 = sbr.rel (%p270_p5) target bundleno = 491 (0x1eb), region = 36 }
 0x1ce   : > { %vm175_vm5 = vcmp.eq.s32.totalorder %v173_v22, %v174_v21 }
 0x1cf   : > { %vm182_vm6 = vmand %vm175_vm5, %vm181_vm4 }
 0x1d0   : > { %v184_v25 = vsel %vm182_vm6, 1.0, %v331_v24 }
 0x1d1   : > { %v185_v26 = vadd.f32 %v184_v25, %v183_v23 }
 0x1d3   : > { %187 = vst.msk [vmem:[#allocation2] sm:$0xff] %vm186_vm7, %v185_v26 }
 0x1da   : > { %v192_v27 = vld [vmem:[#allocation2] sm:$0xff] }
 0x1db   : > { %v193_v28 = vsel %vm186_vm7, %v192_v27, 0.0 }
 0x1dc   : > { %v194_v29 = vrot.slane %v193_v28, 4 }
 0x1de   : > { %v195_v30 = vadd.f32 %v194_v29, %v193_v28 }
 0x1e0   : > { %v196_v31 = vrot.slane %v195_v30, 2 }
 0x1e2   : > { %v197_v32 = vadd.f32 %v196_v31, %v195_v30 }
 0x1e4   : > { %v198_v33 = vrot.slane %v197_v32, 1 }
 0x1e6   : > { %v199_v34 = vadd.f32 %v198_v33, %v197_v32 }
 0x1e8   : > { %v201_v35 = vmul.f32 0.027027028, %v199_v34 }
 0x1ea   : > { %203 = vst.msk [vmem:[#allocation3] sm:$0x1] %vm202_vm8, %v201_v35 }
 0x1eb PF: > { %p279_p6 = scmp.eq.s32.totalorder %s354_s10, 4  ;;  %s332_s20 = smov [#allocation3]  }
 0x1ec   : > { %s211_s21 = sshll.u32 %s332_s20, 4  ;;  %s212_s21 = int_to_ptr.vmem [resolvable:$true] %s211_s21 }
 0x1ed   : > { %s292_s22 = scalar_lea.vmem %s212_s21, 16  ;;  %s298_s23 = scalar_lea.vmem %s212_s21, 32 }
 0x1ee   : > { %p293_p7 = scmp.ne.s32.totalorder %s212_s21, %s292_s22  ;;  %p299_p10 = scmp.lt.s32.totalorder %s212_s21, %s212_s21 }
 0x1ef   : > { %p300_p11 = scmp.lt.s32.totalorder %s298_s23, %s292_s22 }
 0x1f0   : > { %p294_p8 = pnand %p293_p7, %p279_p6 }
 0x1f1   : > { %p301_p12 = por %p300_p11, %p299_p10 }
 0x1f2   : > { %p295_p9 = pneg %p294_p8 }
 0x1f4   : > { %p302_p13 = pnand %p301_p12, %p295_p9 }
 0x1f6   : > { %305 = shalt.err (!%p302_p13)
}
 0x1f7   : > { %s306_s26 = scalar_lea.hbm %s400_s2, 16 }
 0x1f8   : > { %p307_p0 = scmp.ne.s32.totalorder %s400_s2, %s306_s26  ;;  %p312_p3 = scmp.lt.u32.totalorder %s306_s26, %s400_s2 }
 0x1fa   : > { %p308_p1 = pnand %p307_p0, %p279_p6 }
 0x1fc   : > { %p309_p2 = pneg %p308_p1 }
 0x1fe   : > { %p314_p4 = pnand %p312_p3, %p309_p2 }
 0x200   : > { %317 = shalt.err (!%p314_p4)
}
 0x201   : > { %276 = dma.vmem_to_hbm [thread:$0]  (%p279_p6), %s212_s21, 16, %s400_s2, [#allocation4]  }
 0x202   : > { %323 = dma.done.wait (%p279_p6), [#allocation4], 16  }
 0x203   : > { %325 = vsyncadd (%p279_p6), [#allocation4], 4294967280 }
 0x204 PF: > { %s13_s9 = sadd.s32 1, %s328_s9  }
 0x205   : > { %p10_p5 = scmp.ge.s32.totalorder %s13_s9, 7  }
 0x207   :  { %12 = sbr.rel (!%p10_p5) target bundleno = 1 (0x1), region = 66 }
 0x20e   :  { %224 = vsyncpa [#allocation4], 1 }
 0x20f   :  { %226 = vsyncpa [#allocation4 + $0x1], 1 }

</bundles_post_ra>
